<compile_context>
chip_gen: v7x
topology: tpu7x:2x2x1
jax: 0.10.0
libtpu: 0.0.40
codegen_flags: <defaults>
</compile_context>

<pallas_src>
import functools

import jax
import jax.numpy as jnp
from jax import lax
from jax.experimental import pallas as pl
from jax.experimental.pallas import tpu as pltpu

NEG_SLOPE = 0.01
IN_F, HID, OUT_F = 6, 64, 2
TB_MAX = 2048  # batch tile (lane axis); multiple of 256 for the 256-wide MXUs


def _has_bf16_vpu():
    """v6e/v7x have bf16 VPU/EUP paths; v5e and older do not."""
    try:
        kind = jax.devices()[0].device_kind.lower()
    except Exception:
        return True
    return not any(old in kind for old in ("v2", "v3", "v4", "v5"))


def _leaky_relu(x):
    # max(x, 0.01*x) == LeakyReLU(0.01)(x) for slope in (0, 1): 2 VPU ops.
    return jnp.maximum(x, x * jnp.asarray(NEG_SLOPE, x.dtype))


def mlp_kernel(x_ref,
               w1_ref, b1_ref,
               w2_ref, b2_ref,
               w3_ref, b3_ref,
               w4_ref, b4_ref,
               o_ref, *, act_dtype):
    mm_dtype = w1_ref.dtype                      # bf16 (default) or f32

    # x arrives in its natural (tb, IN_F) HBM layout; cast happens in-kernel.
    x = x_ref[...].astype(mm_dtype)

    # fc1: contract the 6-feature axis of both operands -> (HID, tb).
    # Batch lands on the 128-lane axis, so all downstream VPU/EUP work and the
    # final store are fully lane dense.  MXU accumulates in f32.
    h = lax.dot_general(w1_ref[...], x, (((1,), (1,)), ((), ())),
                        preferred_element_type=jnp.float32)
    h = _leaky_relu((h + b1_ref[...]).astype(act_dtype))        # (HID, tb)

    # fc2 + Tanh
    h = jnp.dot(w2_ref[...], h.astype(mm_dtype),
                preferred_element_type=jnp.float32)
    h = jnp.tanh((h + b2_ref[...]).astype(act_dtype))

    # fc3 + LeakyReLU
    h = jnp.dot(w3_ref[...], h.astype(mm_dtype),
                preferred_element_type=jnp.float32)
    h = _leaky_relu((h + b3_ref[...]).astype(act_dtype))

    # fc4 + Tanh
    h = jnp.dot(w4_ref[...], h.astype(mm_dtype),
                preferred_element_type=jnp.float32)
    h = jnp.tanh((h + b4_ref[...]).astype(act_dtype))           # (OUT_F, tb)

    o_ref[...] = h.astype(o_ref.dtype)           # lane-dense (OUT_F, tb) store


@functools.partial(jax.jit,
                   static_argnames=("tb", "use_bf16_matmul", "bf16_activations"))
def neural_network_forward(x, params, *, tb=None, use_bf16_matmul=True,
                           bf16_activations=None):
    """x: (B, 6) float32. params: PyTorch-layout w1..w4 (out, in), b1..b4 (out,)."""
    B = x.shape[0]
    if tb is None:
        tb = B if B <= TB_MAX else TB_MAX        # full-extent single tile if small
    num_tiles = pl.cdiv(B, tb)                   # ragged last tile is masked

    mm_dtype = jnp.bfloat16 if use_bf16_matmul else jnp.float32
    if bf16_activations is None:
        bf16_activations = use_bf16_matmul and _has_bf16_vpu()
    act_dtype = jnp.bfloat16 if (bf16_activations and use_bf16_matmul) else jnp.float32

    # One-time weight prep (tiny): PyTorch (out, in) layout, MXU operand dtype.
    w1 = params["w1"].astype(mm_dtype)           # (64, 6)
    w2 = params["w2"].astype(mm_dtype)           # (64, 64)
    w3 = params["w3"].astype(mm_dtype)           # (64, 64)
    w4 = params["w4"].astype(mm_dtype)           # (2, 64)
    # Biases stay f32, shaped (out, 1) so they broadcast over the lane axis.
    b1 = params["b1"].reshape(HID, 1).astype(jnp.float32)
    b2 = params["b2"].reshape(HID, 1).astype(jnp.float32)
    b3 = params["b3"].reshape(HID, 1).astype(jnp.float32)
    b4 = params["b4"].reshape(OUT_F, 1).astype(jnp.float32)

    mm_bytes = jnp.dtype(mm_dtype).itemsize
    weight_bytes = ((w1.size + w2.size + w3.size + w4.size) * mm_bytes
                    + (b1.size + b2.size + b3.size + b4.size) * 4)
    cost = pl.CostEstimate(
        flops=2 * B * (IN_F * HID + HID * HID + HID * HID + HID * OUT_F),
        transcendentals=B * (HID + OUT_F),
        bytes_accessed=B * (IN_F + OUT_F) * 4 + weight_bytes,
    )

    const = lambda i: (0, 0)   # weights/biases: same block every tile (VMEM resident)

    out_t = pl.pallas_call(
        functools.partial(mlp_kernel, act_dtype=act_dtype),
        out_shape=jax.ShapeDtypeStruct((OUT_F, B), jnp.float32),
        grid=(num_tiles,),
        in_specs=[
            pl.BlockSpec((tb, IN_F), lambda i: (i, 0)),      # x, natural layout
            pl.BlockSpec((HID, IN_F), const), pl.BlockSpec((HID, 1), const),
            pl.BlockSpec((HID, HID), const), pl.BlockSpec((HID, 1), const),
            pl.BlockSpec((HID, HID), const), pl.BlockSpec((HID, 1), const),
            pl.BlockSpec((OUT_F, HID), const), pl.BlockSpec((OUT_F, 1), const),
        ],
        out_specs=pl.BlockSpec((OUT_F, tb), lambda i: (0, i)),
        compiler_params=pltpu.CompilerParams(
            dimension_semantics=("parallel",)),
        cost_estimate=cost,
    )(x, w1, b1, w2, b2, w3, b3, w4, b4)

    # Back to PyTorch (batch, features) convention (tiny (2, B) transpose).
    return out_t.T.astype(x.dtype)


def init_params(key):
    """nn.Linear-style init (uniform +/- 1/sqrt(fan_in)); PyTorch weight layout."""
    dims = [(IN_F, HID), (HID, HID), (HID, HID), (HID, OUT_F)]
    params = {}
    for i, (fan_in, fan_out) in enumerate(dims, start=1):
        key, kw, kb = jax.random.split(key, 3)
        bound = 1.0 / jnp.sqrt(fan_in)
        params[f"w{i}"] = jax.random.uniform(
            kw, (fan_out, fan_in), jnp.float32, minval=-bound, maxval=bound)
        params[f"b{i}"] = jax.random.uniform(
            kb, (fan_out,), jnp.float32, minval=-bound, maxval=bound)
    return params


def reference_forward(x, params):
    """Pure-JAX f32 reference matching the PyTorch forward exactly."""
    def lin(h, w, b):
        return jnp.dot(h, w.T, preferred_element_type=jnp.float32) + b
    leaky = lambda v: jnp.where(v > 0, v, NEG_SLOPE * v)
    h = leaky(lin(x, params["w1"], params["b1"]))
    h = jnp.tanh(lin(h, params["w2"], params["b2"]))
    h = leaky(lin(h, params["w3"], params["b3"]))
    h = jnp.tanh(lin(h, params["w4"], params["b4"]))
    return h


if __name__ == "__main__":
    key = jax.random.PRNGKey(0)
    key, kx, kx2 = jax.random.split(key, 3)
    params = init_params(key)

    # Small deterministic input consistent with the module: (batch=8, features=6).
    B = 8
    x = jax.random.normal(kx, (B, IN_F), jnp.float32)

    # Default path: bf16 MXU operands (+ bf16 activations on v6e/v7x), f32 accum.
    out = jax.block_until_ready(neural_network_forward(x, params))
    assert out.shape == (B, OUT_F), out.shape
    ref = reference_forward(x, params)
    assert jnp.allclose(out, ref, atol=5e-2, rtol=5e-2), "bf16 path mismatch vs f32 ref"

    # Full-f32 kernel path must match the f32 reference tightly.
    out_f32 = jax.block_until_ready(
        neural_network_forward(x, params, use_bf16_matmul=False))
    assert jnp.allclose(out_f32, ref, atol=1e-4, rtol=1e-4), "f32 path mismatch"

    # Multi-tile grid with a ragged last block (exercises the masked boundary path).
    B2 = 300
    x2 = jax.random.normal(kx2, (B2, IN_F), jnp.float32)
    out2 = jax.block_until_ready(
        neural_network_forward(x2, params, tb=128, use_bf16_matmul=False))
    ref2 = reference_forward(x2, params)
    assert out2.shape == (B2, OUT_F), out2.shape
    assert jnp.allclose(out2, ref2, atol=1e-4, rtol=1e-4), "ragged-grid mismatch"

    print("KERNEL_OK")
</pallas_src>

<mosaic_0001>
module attributes {stable_mosaic.version = 11 : i64} {
  func.func @mlp_kernel(%arg0: i32, %arg1: memref<8x6xf32, #tpu.memory_space<vmem>>, %arg2: memref<64x6xbf16, #tpu.memory_space<vmem>>, %arg3: memref<64x1xf32, #tpu.memory_space<vmem>>, %arg4: memref<64x64xbf16, #tpu.memory_space<vmem>>, %arg5: memref<64x1xf32, #tpu.memory_space<vmem>>, %arg6: memref<64x64xbf16, #tpu.memory_space<vmem>>, %arg7: memref<64x1xf32, #tpu.memory_space<vmem>>, %arg8: memref<2x64xbf16, #tpu.memory_space<vmem>>, %arg9: memref<2x1xf32, #tpu.memory_space<vmem>>, %arg10: memref<2x8xf32, #tpu.memory_space<vmem>>) attributes {dimension_semantics = [#tpu.dimension_semantics<parallel>], iteration_bounds = array<i64: 1>, scalar_prefetch = 0 : i64, scratch_operands = 0 : i64, tpu.core_type = #tpu.core_type<tc>, window_params = [{transform_indices = @transform_0, window_bounds = array<i64: 8, 6>}, {pipeline_mode = #tpu.pipeline_mode<synchronous>, transform_indices = @transform_1, window_bounds = array<i64: 64, 6>}, {pipeline_mode = #tpu.pipeline_mode<synchronous>, transform_indices = @transform_2, window_bounds = array<i64: 64, 1>}, {pipeline_mode = #tpu.pipeline_mode<synchronous>, transform_indices = @transform_3, window_bounds = array<i64: 64, 64>}, {pipeline_mode = #tpu.pipeline_mode<synchronous>, transform_indices = @transform_4, window_bounds = array<i64: 64, 1>}, {pipeline_mode = #tpu.pipeline_mode<synchronous>, transform_indices = @transform_5, window_bounds = array<i64: 64, 64>}, {pipeline_mode = #tpu.pipeline_mode<synchronous>, transform_indices = @transform_6, window_bounds = array<i64: 64, 1>}, {pipeline_mode = #tpu.pipeline_mode<synchronous>, transform_indices = @transform_7, window_bounds = array<i64: 2, 64>}, {pipeline_mode = #tpu.pipeline_mode<synchronous>, transform_indices = @transform_8, window_bounds = array<i64: 2, 1>}, {transform_indices = @transform_9, window_bounds = array<i64: 2, 8>}]} {
    %c0 = arith.constant 0 : index
    %c0_0 = arith.constant 0 : index
    %0 = vector.load %arg1[%c0, %c0_0] : memref<8x6xf32, #tpu.memory_space<vmem>>, vector<8x6xf32>
    %1 = arith.truncf %0 : vector<8x6xf32> to vector<8x6xbf16>
    %c0_1 = arith.constant 0 : index
    %c0_2 = arith.constant 0 : index
    %2 = vector.load %arg2[%c0_1, %c0_2] : memref<64x6xbf16, #tpu.memory_space<vmem>>, vector<64x6xbf16>
    %cst = arith.constant dense<0.000000e+00> : vector<64x8xf32>
    %3 = tpu.matmul %2, %1, %cst {dimension_numbers = #tpu.dot_dimension_numbers<[1], [1], [0], [0], [0, 0, 1, 0], [], []>} : vector<64x6xbf16>, vector<8x6xbf16>, vector<64x8xf32> -> vector<64x8xf32>
    %c0_3 = arith.constant 0 : index
    %c0_4 = arith.constant 0 : index
    %4 = vector.load %arg3[%c0_3, %c0_4] : memref<64x1xf32, #tpu.memory_space<vmem>>, vector<64x1xf32>
    %5 = vector.broadcast %4 : vector<64x1xf32> to vector<64x8xf32>
    %6 = arith.addf %3, %5 : vector<64x8xf32>
    %7 = arith.truncf %6 : vector<64x8xf32> to vector<64x8xbf16>
    %cst_5 = arith.constant 1.000980e-02 : bf16
    %8 = vector.broadcast %cst_5 : bf16 to vector<64x8xbf16>
    %9 = arith.mulf %7, %8 : vector<64x8xbf16>
    %10 = arith.maximumf %7, %9 : vector<64x8xbf16>
    %c0_6 = arith.constant 0 : index
    %c0_7 = arith.constant 0 : index
    %11 = vector.load %arg4[%c0_6, %c0_7] : memref<64x64xbf16, #tpu.memory_space<vmem>>, vector<64x64xbf16>
    %cst_8 = arith.constant dense<0.000000e+00> : vector<64x8xf32>
    %12 = tpu.matmul %11, %10, %cst_8 {dimension_numbers = #tpu.dot_dimension_numbers<[1], [0], [0], [1], [0, 0, 1, 1], [], []>} : vector<64x64xbf16>, vector<64x8xbf16>, vector<64x8xf32> -> vector<64x8xf32>
    %c0_9 = arith.constant 0 : index
    %c0_10 = arith.constant 0 : index
    %13 = vector.load %arg5[%c0_9, %c0_10] : memref<64x1xf32, #tpu.memory_space<vmem>>, vector<64x1xf32>
    %14 = vector.broadcast %13 : vector<64x1xf32> to vector<64x8xf32>
    %15 = arith.addf %12, %14 : vector<64x8xf32>
    %16 = arith.truncf %15 : vector<64x8xf32> to vector<64x8xbf16>
    %17 = math.tanh %16 : vector<64x8xbf16>
    %c0_11 = arith.constant 0 : index
    %c0_12 = arith.constant 0 : index
    %18 = vector.load %arg6[%c0_11, %c0_12] : memref<64x64xbf16, #tpu.memory_space<vmem>>, vector<64x64xbf16>
    %cst_13 = arith.constant dense<0.000000e+00> : vector<64x8xf32>
    %19 = tpu.matmul %18, %17, %cst_13 {dimension_numbers = #tpu.dot_dimension_numbers<[1], [0], [0], [1], [0, 0, 1, 1], [], []>} : vector<64x64xbf16>, vector<64x8xbf16>, vector<64x8xf32> -> vector<64x8xf32>
    %c0_14 = arith.constant 0 : index
    %c0_15 = arith.constant 0 : index
    %20 = vector.load %arg7[%c0_14, %c0_15] : memref<64x1xf32, #tpu.memory_space<vmem>>, vector<64x1xf32>
    %21 = vector.broadcast %20 : vector<64x1xf32> to vector<64x8xf32>
    %22 = arith.addf %19, %21 : vector<64x8xf32>
    %23 = arith.truncf %22 : vector<64x8xf32> to vector<64x8xbf16>
    %cst_16 = arith.constant 1.000980e-02 : bf16
    %24 = vector.broadcast %cst_16 : bf16 to vector<64x8xbf16>
    %25 = arith.mulf %23, %24 : vector<64x8xbf16>
    %26 = arith.maximumf %23, %25 : vector<64x8xbf16>
    %c0_17 = arith.constant 0 : index
    %c0_18 = arith.constant 0 : index
    %27 = vector.load %arg8[%c0_17, %c0_18] : memref<2x64xbf16, #tpu.memory_space<vmem>>, vector<2x64xbf16>
    %cst_19 = arith.constant dense<0.000000e+00> : vector<2x8xf32>
    %28 = tpu.matmul %27, %26, %cst_19 {dimension_numbers = #tpu.dot_dimension_numbers<[1], [0], [0], [1], [0, 0, 1, 1], [], []>} : vector<2x64xbf16>, vector<64x8xbf16>, vector<2x8xf32> -> vector<2x8xf32>
    %c0_20 = arith.constant 0 : index
    %c0_21 = arith.constant 0 : index
    %29 = vector.load %arg9[%c0_20, %c0_21] : memref<2x1xf32, #tpu.memory_space<vmem>>, vector<2x1xf32>
    %30 = vector.broadcast %29 : vector<2x1xf32> to vector<2x8xf32>
    %31 = arith.addf %28, %30 : vector<2x8xf32>
    %32 = arith.truncf %31 : vector<2x8xf32> to vector<2x8xbf16>
    %33 = math.tanh %32 : vector<2x8xbf16>
    %34 = arith.extf %33 : vector<2x8xbf16> to vector<2x8xf32>
    %c0_22 = arith.constant 0 : index
    %c0_23 = arith.constant 0 : index
    %35 = vector.load %arg10[%c0_22, %c0_23] : memref<2x8xf32, #tpu.memory_space<vmem>>, vector<2x8xf32>
    tpu.vector_store %arg10[%c0_22, %c0_23], %34 {strides = array<i32>} : memref<2x8xf32, #tpu.memory_space<vmem>>, vector<2x8xf32>,
    return
  }
  func.func @transform_0(%arg0: i32) -> (i32, i32) {
    %c0_i32 = arith.constant 0 : i32
    %c0_i32_0 = arith.constant 0 : i32
    return %arg0, %c0_i32 : i32, i32
  }
  func.func @transform_1(%arg0: i32) -> (i32, i32) {
    %c0_i32 = arith.constant 0 : i32
    %c0_i32_0 = arith.constant 0 : i32
    %c0_i32_1 = arith.constant 0 : i32
    return %c0_i32, %c0_i32_0 : i32, i32
  }
  func.func @transform_2(%arg0: i32) -> (i32, i32) {
    %c0_i32 = arith.constant 0 : i32
    %c0_i32_0 = arith.constant 0 : i32
    %c0_i32_1 = arith.constant 0 : i32
    return %c0_i32, %c0_i32_0 : i32, i32
  }
  func.func @transform_3(%arg0: i32) -> (i32, i32) {
    %c0_i32 = arith.constant 0 : i32
    %c0_i32_0 = arith.constant 0 : i32
    %c0_i32_1 = arith.constant 0 : i32
    return %c0_i32, %c0_i32_0 : i32, i32
  }
  func.func @transform_4(%arg0: i32) -> (i32, i32) {
    %c0_i32 = arith.constant 0 : i32
    %c0_i32_0 = arith.constant 0 : i32
    %c0_i32_1 = arith.constant 0 : i32
    return %c0_i32, %c0_i32_0 : i32, i32
  }
  func.func @transform_5(%arg0: i32) -> (i32, i32) {
    %c0_i32 = arith.constant 0 : i32
    %c0_i32_0 = arith.constant 0 : i32
    %c0_i32_1 = arith.constant 0 : i32
    return %c0_i32, %c0_i32_0 : i32, i32
  }
  func.func @transform_6(%arg0: i32) -> (i32, i32) {
    %c0_i32 = arith.constant 0 : i32
    %c0_i32_0 = arith.constant 0 : i32
    %c0_i32_1 = arith.constant 0 : i32
    return %c0_i32, %c0_i32_0 : i32, i32
  }
  func.func @transform_7(%arg0: i32) -> (i32, i32) {
    %c0_i32 = arith.constant 0 : i32
    %c0_i32_0 = arith.constant 0 : i32
    %c0_i32_1 = arith.constant 0 : i32
    return %c0_i32, %c0_i32_0 : i32, i32
  }
  func.func @transform_8(%arg0: i32) -> (i32, i32) {
    %c0_i32 = arith.constant 0 : i32
    %c0_i32_0 = arith.constant 0 : i32
    %c0_i32_1 = arith.constant 0 : i32
    return %c0_i32, %c0_i32_0 : i32, i32
  }
  func.func @transform_9(%arg0: i32) -> (i32, i32) {
    %c0_i32 = arith.constant 0 : i32
    %c0_i32_0 = arith.constant 0 : i32
    return %c0_i32, %arg0 : i32, i32
  }
}

</mosaic_0001>

<bundles_post_ra>
// kernel: neural_network_forward.1
= control target key start
LH: loop header
LB: loop body
LE: loop exit
PB: predicated region body
PF: predicated region fallthrough
CT: control target
= control target key end

     0   :  { %vm113_vm0 = vcmask 48128   ;;  %v760_v3 = vmov 0   ;;  %s958_s0 = inlined_call_operand.vmem [shape: f32[8,6], index: 0, kind: input, shape index: {}]   ;;  %s959_s1 = inlined_call_operand.vmem [shape: bf16[64,6], index: 1, kind: input, shape index: {}]   ;;  %s960_s2 = inlined_call_operand.vmem [shape: f32[64,1], index: 2, kind: input, shape index: {}]   ;;  %s961_s3 = inlined_call_operand.vmem [shape: bf16[64,64], index: 3, kind: input, shape index: {}]   ;;  %s962_s4 = inlined_call_operand.vmem [shape: f32[64,1], index: 4, kind: input, shape index: {}]   ;;  %s963_s5 = inlined_call_operand.vmem [shape: bf16[64,64], index: 5, kind: input, shape index: {}]   ;;  %s964_s6 = inlined_call_operand.vmem [shape: f32[64,1], index: 6, kind: input, shape index: {}]   ;;  %s965_s7 = inlined_call_operand.vmem [shape: bf16[2,64], index: 7, kind: input, shape index: {}]   ;;  %s966_s8 = inlined_call_operand.vmem [shape: f32[2,1], index: 8, kind: input, shape index: {}]   ;;  %s967_s9 = inlined_call_operand.hbm [shape: f32[2,8], index: 9, kind: output, shape index: {}]  }
   0x1   :  { %v35_v0 = vld [vmem:[%s958_s0] sm:$0xff]  ;;  %712 = vset.pattern.permute.xlu0 %v760_v3  ;;  %713 = vset.pattern.permute.xlu1 %v760_v3  ;;  %v47_v6 = vld [vmem:[%s960_s2 + $0x10] sm:$0xff]  ;;  %v46_v7 = vld [vmem:[%s960_s2 + $0x8] sm:$0xff] }
   0x2   :  { %v36_v1 = vpack.c.bf16 %v35_v0, %v35_v0  ;;  %v714_v2 = vld [vmem:[%s959_s1] sm:$0xff]   ;;  %65 = vperm.xlu1 %713, %v47_v6   ;;  %v715_v8 = vld [vmem:[%s959_s1 + $0x8] sm:$0xff]   ;;  %v48_v9 = vld [vmem:[%s960_s2 + $0x18] sm:$0xff] }
   0x3   :  { %655 = vmatprep.mubr.msk.bf16.mxu0 %vm113_vm0, %v714_v2  ;;  %v45_v5 = vld [vmem:[%s960_s2] sm:$0xff]  ;;  %v716_v10 = vld [vmem:[%s959_s1 + $0x10] sm:$0xff]   ;;  %v50_v12 = vld [vmem:[%s960_s2 + $0x28] sm:$0xff] }
   0x4   :  { %707 = vmatprep.subr.msk.bf16.mxu0 %vm113_vm0, %v36_v1  ;;  %v127_v4 = vsel %vm113_vm0, %v36_v1, 0  ;;  %55 = vperm.xlu0 %712, %v45_v5   ;;  %v49_v11 = vld [vmem:[%s960_s2 + $0x20] sm:$0xff]  ;;  %v51_v13 = vld [vmem:[%s960_s2 + $0x30] sm:$0xff]  ;;  %v717_v14 = vld [vmem:[%s959_s1 + $0x18] sm:$0xff]  }
   0x5   :  { %654 = vmatpush3.bf16.xpose.msra.mxu0 %v127_v4  ;;  %v52_v15 = vld [vmem:[%s960_s2 + $0x38] sm:$0xff]  ;;  %v214_v16 = vld [vmem:[%s962_s4] sm:$0xff] }
   0x6   :  { %70 = vperm.xlu1 %713, %v48_v9  }
   0x8   :  { %60 = vperm.xlu0 %712, %v46_v7  }
   0xa   :  { %80 = vperm.xlu1 %713, %v50_v12  }
   0xc   :  { %656 = vmatmul.mubr.msk.bf16.vlgmr.msra.gmra.mrb[0].mxu0 %vm113_vm0, %v715_v8  ;;  %75 = vperm.xlu0 %712, %v49_v11  }
   0xd   :  { %659 = vmatprep.mubr.msk.bf16.mxu0 %vm113_vm0, %v716_v10 }
   0xe   :  { %90 = vperm.xlu1 %713, %v52_v15  }
  0x10   :  { %85 = vperm.xlu0 %712, %v51_v13  }
  0x11   :  { %14 = vsyncpa [#allocation3], 0  ;;  %v215_v17 = vld [vmem:[%s962_s4 + $0x8] sm:$0xff]  ;;  %v216_v18 = vld [vmem:[%s962_s4 + $0x10] sm:$0xff]  ;;  %vm282_vm1 = vcmask 523264   ;;  %vm762_vm2 = vmmov 0  }
  0x12   :  { %229 = vperm.xlu1 %713, %v215_v17   ;;  %v217_v19 = vld [vmem:[%s962_s4 + $0x18] sm:$0xff]  ;;  %v218_v20 = vld [vmem:[%s962_s4 + $0x20] sm:$0xff]  ;;  %v219_v21 = vld [vmem:[%s962_s4 + $0x28] sm:$0xff]  ;;  %s763_s12 = smov [#allocation2]   ;;  %vm586_vm3 = vcmask 58368  }
  0x13   :  { %v220_v22 = vld [vmem:[%s962_s4 + $0x30] sm:$0xff]  ;;  %v221_v23 = vld [vmem:[%s962_s4 + $0x38] sm:$0xff]  ;;  %v376_v24 = vld [vmem:[%s964_s6] sm:$0xff]  ;;  %s594_s4 = sshll.u32 %s763_s12, 4  ;;  %s595_s4 = int_to_ptr.vmem [resolvable:$true] %s594_s4 }
  0x14   :  { %660 = vmatmul.mubr.msk.bf16.gmra.mrb[4].mxu0 %vm113_vm0, %v717_v14  ;;  %224 = vperm.xlu0 %712, %v214_v16   ;;  %v377_v25 = vld [vmem:[%s964_s6 + $0x8] sm:$0xff]  ;;  %v378_v26 = vld [vmem:[%s964_s6 + $0x10] sm:$0xff]  ;;  %v379_v27 = vld [vmem:[%s964_s6 + $0x18] sm:$0xff]  ;;  %s736_s13 = scalar_lea.vmem %s595_s4, 32  ;;  %p741_p1 = scmp.lt.s32.totalorder %s595_s4, %s595_s4 }
  0x15   :  { %v380_v28 = vld [vmem:[%s964_s6 + $0x20] sm:$0xff]  ;;  %v381_v29 = vld [vmem:[%s964_s6 + $0x28] sm:$0xff]  ;;  %v382_v30 = vld [vmem:[%s964_s6 + $0x30] sm:$0xff]  ;;  %p737_p0 = scmp.ne.s32.totalorder %s595_s4, %s736_s13  ;;  %p742_p2 = scmp.lt.s32.totalorder %s736_s13, %s736_s13 }
  0x16   :  { %239 = vperm.xlu1 %713, %v217_v19   ;;  %v383_v31 = vld [vmem:[%s964_s6 + $0x38] sm:$0xff]  ;;  %v534_v32 = vld [vmem:[%s966_s8] sm:$0x3]  ;;  %v719_v6 = vld [vmem:[%s961_s3 + $0x8] sm:$0xff]  }
  0x17   :  { %v718_v33 = vld [vmem:[%s961_s3] sm:$0xff]   ;;  %v720_v7 = vld [vmem:[%s961_s3 + $0x10] sm:$0xff]   ;;  %v721_v8 = vld [vmem:[%s961_s3 + $0x18] sm:$0xff]   ;;  %p743_p3 = por %p742_p2, %p741_p1 }
  0x18   :  { %234 = vperm.xlu0 %712, %v216_v18   ;;  %671 = vmatprep.mubr.msk.bf16.mxu1 %vm282_vm1, %v718_v33  ;;  %v722_v9 = vld [vmem:[%s963_s5] sm:$0xff]  }
  0x19   :  { %687 = vmatprep.mubr.msk.bf16.mxu0 %vm282_vm1, %v722_v9  ;;  %p744_p4 = pnand %p743_p3, %p737_p0 }
  0x1a   :  { %249 = vperm.xlu1 %713, %v219_v21  }
  0x1c   :  { %244 = vperm.xlu0 %712, %v218_v20  }
  0x1e   :  { %259 = vperm.xlu1 %713, %v221_v23  }
  0x20   :  { %254 = vperm.xlu0 %712, %v220_v22  }
  0x22   :  { %391 = vperm.xlu1 %713, %v377_v25  }
  0x24   :  { %386 = vperm.xlu0 %712, %v376_v24  }
  0x26   :  { %401 = vperm.xlu1 %713, %v379_v27  }
  0x28   :  { %396 = vperm.xlu0 %712, %v378_v26  }
  0x2a   :  { %411 = vperm.xlu1 %713, %v381_v29  }
  0x2c   :  { %406 = vperm.xlu0 %712, %v380_v28  }
  0x2e   :  { %421 = vperm.xlu1 %713, %v383_v31  }
  0x30   :  { %416 = vperm.xlu0 %712, %v382_v30  }
  0x34   :  { %537 = vperm.xlu0 %712, %v534_v32  }
  0x81   :  { %v66_v35 = vpop.permute.xlu1 %65 }
  0x83   :  { %v56_v34 = vpop.permute.xlu0 %55 }
  0x85   :  { %v71_v37 = vpop.permute.xlu1 %70 }
  0x87   :  { %v61_v36 = vpop.permute.xlu0 %60 }
  0x89   :  { %v81_v45 = vpop.permute.xlu1 %80 }
  0x8b   :  { %v76_v41 = vpop.permute.xlu0 %75 }
  0x8d   :  { %v91_v55 = vpop.permute.xlu1 %90 }
  0x8f   :  { %v86_v53 = vpop.permute.xlu0 %85 }
  0x91   :  { %v230_v11 = vpop.permute.xlu1 %229 }
  0x93   :  { %v225_v10 = vpop.permute.xlu0 %224 }
  0x95   :  { %v240_v13 = vpop.permute.xlu1 %239 }
  0x97   :  { %v235_v12 = vpop.permute.xlu0 %234 }
  0x99   :  { %v250_v21 = vpop.permute.xlu1 %249 }
  0x9b   :  { %v245_v17 = vpop.permute.xlu0 %244 }
  0x9d   :  { %v260_v29 = vpop.permute.xlu1 %259 }
  0x9f   :  { %v255_v27 = vpop.permute.xlu0 %254 }
  0xdf   :  { %v657_v38 = vpop.f32.mrb[0].mxu0 }
  0xe0   :  { %v163_v39 = vpop.f32.mrb[1].mxu0  ;;  %v172_v42 = vadd.f32 %v657_v38, %v66_v35 }
  0xe1   :  { %v658_v40 = vpop.f32.mrb[2].mxu0  ;;  %v164_v46 = vadd.f32 %v163_v39, %v56_v34 }
  0xe2   :  { %v175_v43 = vadd.f32 %v658_v40, %v71_v37  ;;  %v166_v44 = vpop.f32.mrb[3].mxu0 }
  0xe3   :  { %v167_v47 = vadd.f32 %v166_v44, %v61_v36  ;;  %v725_v44 = vld [vmem:[%s963_s5 + $0x18] sm:$0xff]  }
  0xe4   :  { %v195_v48 = vpack.c.bf16 %v175_v43, %v172_v42  ;;  %v723_v42 = vld [vmem:[%s963_s5 + $0x8] sm:$0xff]   ;;  %v724_v43 = vld [vmem:[%s963_s5 + $0x10] sm:$0xff]  }
  0xe5   :  { %v194_v49 = vpack.c.bf16 %v167_v47, %v164_v46  ;;  %v387_v46 = vpop.permute.xlu0 %386  ;;  %v392_v47 = vpop.permute.xlu1 %391 }
  0xe6   :  { %v199_v50 = vmul.bf16 1009007652, %v195_v48 }
  0xe7   :  { %v661_v51 = vpop.f32.mrb[4].mxu0  ;;  %v198_v52 = vmul.bf16 1009007652, %v194_v49 }
  0xe8   :  { %v179_v54 = vpop.f32.mrb[5].mxu0  ;;  %v188_v58 = vadd.f32 %v661_v51, %v86_v53  ;;  %v203_v63 = vmax.bf16 %v199_v50, %v195_v48 }
  0xe9   :  { %v662_v56 = vpop.f32.mrb[6].mxu0  ;;  %v202_v57 = vmax.bf16 %v198_v52, %v194_v49  ;;  %v180_v61 = vadd.f32 %v179_v54, %v76_v41  ;;  %v397_v48 = vpop.permute.xlu0 %396 }
  0xea   :  { %v191_v59 = vadd.f32 %v662_v56, %v91_v55  ;;  %v182_v60 = vpop.f32.mrb[7].mxu0  ;;  %v402_v49 = vpop.permute.xlu1 %401 }
  0xeb   :  { %v183_v62 = vadd.f32 %v182_v60, %v81_v45  ;;  %663 = vmatprep.subr.bf16.mxu1 %v202_v57  ;;  %v761_v45 = vmov 0.0  }
  0xec   :  { %v197_v0 = vpack.c.bf16 %v191_v59, %v188_v58  ;;  %664 = vmatpush3.bf16.msra.mxu1 %v202_v57 }
  0xed   :  { %v196_v1 = vpack.c.bf16 %v183_v62, %v180_v61  ;;  %665 = vmatprep.subr.bf16.mxu1 %v203_v63  ;;  %v407_v53 = vpop.permute.xlu0 %406 }
  0xee   :  { %v201_v2 = vmul.bf16 1009007652, %v197_v0  ;;  %v412_v57 = vpop.permute.xlu1 %411 }
  0xef   :  { %v200_v3 = vmul.bf16 1009007652, %v196_v1 }
  0xf0   :  { %666 = vmatpush3.bf16.msra.mxu1 %v203_v63  ;;  %v205_v5 = vmax.bf16 %v201_v2, %v197_v0 }
  0xf1   :  { %v204_v4 = vmax.bf16 %v200_v3, %v196_v1  ;;  %v417_v0 = vpop.permute.xlu0 %416 }
  0xf2   :  { %v422_v2 = vpop.permute.xlu1 %421 }
  0xf3   :  { %667 = vmatprep.subr.bf16.mxu1 %v204_v4 }
  0xf4   :  { %668 = vmatpush3.bf16.msra.mxu1 %v204_v4 }
  0xf5   :  { %669 = vmatprep.subr.bf16.mxu1 %v205_v5 }
  0xf8   :  { %670 = vmatpush3.bf16.msra.mxu1 %v205_v5 }
  0xf9   :  { %695 = vmatprep.subr.bf16.mxu1 %v761_v45 }
  0xfb   :  { %672 = vmatmul.mubr.msk.bf16.vlgmr.msra.gmra.mrb[0].mxu1 %vm282_vm1, %v719_v6 }
  0xfc   :  { %675 = vmatprep.mubr.msk.bf16.mxu1 %vm282_vm1, %v720_v7 }
 0x103   :  { %676 = vmatmul.mubr.msk.bf16.gmra.mrb[4].mxu1 %vm282_vm1, %v721_v8 }
 0x104   :  { %703 = vmatprep.mubr.msk.bf16.mxu1 %vm762_vm2, %v761_v45 }
 0x1ce   :  { %v673_v14 = vpop.f32.mrb[0].mxu1 }
 0x1cf   :  { %v329_v15 = vpop.f32.mrb[1].mxu1  ;;  %v338_v18 = vadd.f32 %v673_v14, %v235_v12 }
 0x1d0   :  { %v674_v16 = vpop.f32.mrb[2].mxu1  ;;  %v330_v22 = vadd.f32 %v329_v15, %v225_v10 }
 0x1d1   :  { %v341_v19 = vadd.f32 %v674_v16, %v240_v13  ;;  %v332_v20 = vpop.f32.mrb[3].mxu1 }
 0x1d2   :  { %v333_v23 = vadd.f32 %v332_v20, %v230_v11 }
 0x1d3   :  { %v361_v24 = vpack.c.bf16 %v341_v19, %v338_v18  ;;  %v533_v18 = vld [vmem:[%s965_s7] sm:$0x1]  ;;  %v538_v19 = vpop.permute.xlu0 %537 }
 0x1d4   :  { %v360_v25 = vpack.c.bf16 %v333_v23, %v330_v22 }
 0x1d6   :  { %726 = vtanh.bf16 %v360_v25  ;;  %v677_v26 = vpop.f32.mrb[4].mxu1 }
 0x1d7   :  { %v345_v28 = vpop.f32.mrb[5].mxu1  ;;  %728 = vtanh.bf16 %v361_v24  ;;  %v354_v31 = vadd.f32 %v677_v26, %v255_v27 }
 0x1d8   :  { %v678_v30 = vpop.f32.mrb[6].mxu1  ;;  %v346_v34 = vadd.f32 %v345_v28, %v245_v17 }
 0x1d9   :  { %v357_v32 = vadd.f32 %v678_v30, %v260_v29  ;;  %v348_v33 = vpop.f32.mrb[7].mxu1 }
 0x1da   :  { %v349_v35 = vadd.f32 %v348_v33, %v250_v21 }
 0x1db   :  { %v363_v36 = vpack.c.bf16 %v357_v32, %v354_v31 }
 0x1dc   :  { %v362_v37 = vpack.c.bf16 %v349_v35, %v346_v34 }
 0x1de   :  { %730 = vtanh.bf16 %v362_v37 }
 0x1df   :  { %732 = vtanh.bf16 %v363_v36 }
 0x1e1   :  { %v727_v38 = vpop.eup %726 }
 0x1e2   :  { %679 = vmatprep.subr.bf16.mxu0 %v727_v38  ;;  %v729_v39 = vpop.eup %728 }
 0x1e3   :  { %680 = vmatpush3.bf16.msra.mxu0 %v727_v38 }
 0x1e4   :  { %681 = vmatprep.subr.bf16.mxu0 %v729_v39 }
 0x1e7   :  { %682 = vmatpush3.bf16.msra.mxu0 %v729_v39 }
 0x1e9   :  { %v731_v40 = vpop.eup %730 }
 0x1ea   :  { %683 = vmatprep.subr.bf16.mxu0 %v731_v40  ;;  %v733_v41 = vpop.eup %732 }
 0x1eb   :  { %684 = vmatpush3.bf16.msra.mxu0 %v731_v40 }
 0x1ec   :  { %685 = vmatprep.subr.bf16.mxu0 %v733_v41 }
 0x1ef   :  { %686 = vmatpush3.bf16.msra.mxu0 %v733_v41 }
 0x1f2   :  { %688 = vmatmul.mubr.msk.bf16.vlgmr.msra.gmra.mrb[8].mxu0 %vm282_vm1, %v723_v42 }
 0x1f3   :  { %691 = vmatprep.mubr.msk.bf16.mxu0 %vm282_vm1, %v724_v43 }
 0x1fa   :  { %692 = vmatmul.mubr.msk.bf16.gmra.mrb[12].mxu0 %vm282_vm1, %v725_v44 }
 0x2c5   :  { %v689_v50 = vpop.f32.mrb[8].mxu0 }
 0x2c6   :  { %v490_v51 = vpop.f32.mrb[9].mxu0  ;;  %v499_v54 = vadd.f32 %v689_v50, %v397_v48 }
 0x2c7   :  { %v690_v52 = vpop.f32.mrb[10].mxu0  ;;  %v491_v58 = vadd.f32 %v490_v51, %v387_v46 }
 0x2c8   :  { %v502_v55 = vadd.f32 %v690_v52, %v402_v49  ;;  %v493_v56 = vpop.f32.mrb[11].mxu0 }
 0x2c9   :  { %v494_v59 = vadd.f32 %v493_v56, %v392_v47 }
 0x2ca   :  { %v522_v60 = vpack.c.bf16 %v502_v55, %v499_v54 }
 0x2cb   :  { %v521_v61 = vpack.c.bf16 %v494_v59, %v491_v58 }
 0x2cc   :  { %v526_v3 = vmul.bf16 1009007652, %v522_v60 }
 0x2cd   :  { %v525_v62 = vmul.bf16 1009007652, %v521_v61  ;;  %v693_v63 = vpop.f32.mrb[12].mxu0 }
 0x2ce   :  { %v506_v1 = vpop.f32.mrb[13].mxu0  ;;  %v515_v6 = vadd.f32 %v693_v63, %v417_v0  ;;  %v530_v12 = vmax.bf16 %v526_v3, %v522_v60 }
 0x2cf   :  { %v529_v4 = vmax.bf16 %v525_v62, %v521_v61  ;;  %v694_v5 = vpop.f32.mrb[14].mxu0  ;;  %v507_v9 = vadd.f32 %v506_v1, %v407_v53 }
 0x2d0   :  { %v518_v7 = vadd.f32 %v694_v5, %v422_v2  ;;  %v509_v8 = vpop.f32.mrb[15].mxu0 }
 0x2d1   :  { %v510_v10 = vadd.f32 %v509_v8, %v412_v57  ;;  %696 = vmatpush3.bf16.msra.mxu1 %v529_v4 }
 0x2d2   :  { %v524_v11 = vpack.c.bf16 %v518_v7, %v515_v6  ;;  %697 = vmatprep.subr.bf16.mxu1 %v761_v45 }
 0x2d3   :  { %v523_v13 = vpack.c.bf16 %v510_v10, %v507_v9 }
 0x2d4   :  { %v528_v15 = vmul.bf16 1009007652, %v524_v11 }
 0x2d5   :  { %v527_v14 = vmul.bf16 1009007652, %v523_v13  ;;  %698 = vmatpush3.bf16.msra.mxu1 %v530_v12 }
 0x2d6   :  { %699 = vmatprep.subr.bf16.mxu1 %v761_v45  ;;  %v532_v17 = vmax.bf16 %v528_v15, %v524_v11 }
 0x2d7   :  { %v531_v16 = vmax.bf16 %v527_v14, %v523_v13 }
 0x2d9   :  { %700 = vmatpush3.bf16.msra.mxu1 %v531_v16 }
 0x2da   :  { %701 = vmatprep.subr.bf16.mxu1 %v761_v45 }
 0x2dd   :  { %702 = vmatpush3.bf16.msra.mxu1 %v532_v17 }
 0x2e0   :  { %704 = vmatmul.mubr.msk.bf16.vlgmr.msra.gmra.mrb[8].mxu1 %vm282_vm1, %v533_v18 }
 0x3b3   :  { %v577_v20 = vpop.f32.mrb[8].mxu1 }
 0x3b4   :  { %v578_v21 = vadd.f32 %v577_v20, %v538_v19  ;;  %v705_v22 = vpop.f32.mrb[9].mxu1 }
 0x3b5   :  { %v580_v23 = vpop.f32.mrb[10].mxu1 }
 0x3b6   :  { %v583_v24 = vpack.c.bf16 %v578_v21, %v578_v21  ;;  %v706_v25 = vpop.f32.mrb[11].mxu1 }
 0x3b8   :  { %734 = vtanh.bf16 %v583_v24 }
 0x3c3   :  { %v735_v26 = vpop.eup %734 }
 0x3c4   :  { %v585_v27 = vunpack.c.l.bf16 %v735_v26 }
 0x3c6   :  { %587 = vst.msk [vmem:[#allocation2] sm:$0x3] %vm586_vm3, %v585_v27 }
 0x3c7   :  { %747 = shalt.err (!%p744_p4)
}
 0x3c8   :  { %s748_s0 = scalar_lea.hbm %s967_s9, 32 }
 0x3c9   :  { %p749_p5 = scmp.ne.s32.totalorder %s967_s9, %s748_s0  ;;  %p752_p6 = scmp.lt.u32.totalorder %s748_s0, %s967_s9 }
 0x3cb   :  { %p754_p7 = pnand %p752_p6, %p749_p5 }
 0x3cd   :  { %757 = shalt.err (!%p754_p7)
}
 0x3ce   :  { %597 = dma.vmem_to_hbm [thread:$0]  %s595_s4, 32, %s967_s9, [#allocation3]  }
 0x3cf   :  { %758 = dma.done.wait [#allocation3], 32  }
 0x3d0   :  { %759 = vsyncadd [#allocation3], 4294967264 }
 0x3d1   :  { %601 = vsyncpa [#allocation3], 1 }

</bundles_post_ra>
